<compile_context>
chip_gen: v5e
topology: v5e:2x2
jax: 0.10.0
libtpu: 0.0.40
codegen_flags: <defaults>
</compile_context>

<pallas_src>
import jax
import jax.numpy as jnp
from jax.experimental import pallas as pl
from jax.experimental.pallas import tpu as pltpu

IN_DIM = 64
HID_DIM = 128
OUT_DIM = 64
OUT_PAD = 128  # lane-dense output slab (64 -> 128 lanes)


def mlp_kernel(x_ref, w1_ref, b1_ref, w2_ref, b2_ref, o_ref):
    # fc1 -> bias -> ReLU -> fc2 -> bias, fully fused. f32 accumulation on MXU.
    x = x_ref[...]                                                  # (tb, 64)
    h = jnp.dot(x, w1_ref[...], preferred_element_type=jnp.float32)  # (tb, 128) f32
    h = jnp.maximum(h + b1_ref[...], 0.0)                           # bias + ReLU in f32
    h = h.astype(w2_ref.dtype)                                      # back to stream dtype
    y = jnp.dot(h, w2_ref[...], preferred_element_type=jnp.float32)  # (tb, 128) f32
    o_ref[...] = (y + b2_ref[...]).astype(o_ref.dtype)


def reversi_forward(x, w1, b1, w2, b2, *, tb=512, compute_dtype=None, out_dtype=None):
    """x: (B, 64). Weights stored (in, out) -> y = x @ W + b (== nn.Linear).

    Works for any B (pads to a multiple of tb); returns (B, 64) in out_dtype
    (defaults to x.dtype). compute_dtype controls the streamed/MXU dtype
    (e.g. jnp.bfloat16 on v6e/v7x); accumulation is always f32.
    """
    B = x.shape[0]
    out_dtype = out_dtype if out_dtype is not None else x.dtype
    compute_dtype = compute_dtype if compute_dtype is not None else x.dtype

    # Pad batch up to a multiple of the (large) batch tile.
    n_tiles = pl.cdiv(B, tb)
    B_pad = n_tiles * tb
    if B_pad != B:
        x = jnp.pad(x, ((0, B_pad - B), (0, 0)))

    # Pad fc2 to a 128-lane output so stores are lane-dense (no masked vst).
    w2p = jnp.pad(w2, ((0, 0), (0, OUT_PAD - OUT_DIM)))
    b2p = jnp.pad(b2, (0, OUT_PAD - OUT_DIM))

    xs = x.astype(compute_dtype)
    w1c = w1.astype(compute_dtype)
    w2c = w2p.astype(compute_dtype)
    b1_2d = b1.reshape(1, HID_DIM).astype(jnp.float32)   # biases stay f32
    b2_2d = b2p.reshape(1, OUT_PAD).astype(jnp.float32)

    dsize = jnp.dtype(compute_dtype).itemsize
    osize = jnp.dtype(out_dtype).itemsize
    cost = pl.CostEstimate(
        flops=2 * B_pad * (IN_DIM * HID_DIM + HID_DIM * OUT_PAD),
        transcendentals=0,
        bytes_accessed=(B_pad * IN_DIM * dsize
                        + B_pad * OUT_PAD * osize
                        + (IN_DIM * HID_DIM + HID_DIM * OUT_PAD) * dsize
                        + (HID_DIM + OUT_PAD) * 4),
    )

    out = pl.pallas_call(
        mlp_kernel,
        out_shape=jax.ShapeDtypeStruct((B_pad, OUT_PAD), out_dtype),
        grid_spec=pltpu.PrefetchScalarGridSpec(
            num_scalar_prefetch=0,
            grid=(n_tiles,),
            in_specs=[
                pl.BlockSpec((tb, IN_DIM), lambda i: (i, 0)),        # x tile (streamed)
                pl.BlockSpec((IN_DIM, HID_DIM), lambda i: (0, 0)),   # W1 (resident)
                pl.BlockSpec((1, HID_DIM), lambda i: (0, 0)),        # b1 (resident)
                pl.BlockSpec((HID_DIM, OUT_PAD), lambda i: (0, 0)),  # W2 padded (resident)
                pl.BlockSpec((1, OUT_PAD), lambda i: (0, 0)),        # b2 padded (resident)
            ],
            out_specs=pl.BlockSpec((tb, OUT_PAD), lambda i: (i, 0)),  # lane-dense output
        ),
        compiler_params=pltpu.CompilerParams(
            dimension_semantics=("parallel",)),
        cost_estimate=cost,
    )(xs, w1c, b1_2d, w2c, b2_2d)

    return out[:B, :OUT_DIM]


def init_params(key):
    """Deterministic init mimicking nn.Linear defaults: U(-1/sqrt(fan_in), ...)."""
    k1, k2, k3, k4 = jax.random.split(key, 4)
    bound1 = 1.0 / (IN_DIM ** 0.5)
    bound2 = 1.0 / (HID_DIM ** 0.5)
    # stored as (in, out) so the kernel computes x @ W
    w1 = jax.random.uniform(k1, (IN_DIM, HID_DIM), jnp.float32, -bound1, bound1)
    b1 = jax.random.uniform(k2, (HID_DIM,), jnp.float32, -bound1, bound1)
    w2 = jax.random.uniform(k3, (HID_DIM, OUT_DIM), jnp.float32, -bound2, bound2)
    b2 = jax.random.uniform(k4, (OUT_DIM,), jnp.float32, -bound2, bound2)
    return w1, b1, w2, b2


def reference_forward(x, w1, b1, w2, b2):
    h = jnp.maximum(x @ w1 + b1, 0.0)
    return h @ w2 + b2


if __name__ == "__main__":
    key = jax.random.PRNGKey(0)
    kx, kp, kx2 = jax.random.split(key, 3)
    w1, b1, w2, b2 = init_params(kp)

    # Small demo batch matching the module (board flattened 8x8 -> 64 features).
    B = 8
    x = jax.random.normal(kx, (B, IN_DIM), jnp.float32)
    out = jax.block_until_ready(reversi_forward(x, w1, b1, w2, b2))
    ref = reference_forward(x, w1, b1, w2, b2)
    assert out.shape == (B, OUT_DIM)
    assert jnp.allclose(out, ref, atol=1e-5, rtol=1e-5)

    # Larger, non-tile-aligned batch: exercises the padded multi-step grid and
    # the bf16 streaming path (f32 accumulation, f32 bias/ReLU) for v6e/v7x.
    B2 = 1000
    x2 = jax.random.normal(kx2, (B2, IN_DIM), jnp.float32)
    out2 = jax.block_until_ready(
        reversi_forward(x2, w1, b1, w2, b2, tb=512, compute_dtype=jnp.bfloat16))
    ref2 = reference_forward(x2, w1, b1, w2, b2)
    assert out2.shape == (B2, OUT_DIM)
    assert jnp.allclose(out2, ref2, atol=1e-1, rtol=5e-2)

    print("KERNEL_OK")
</pallas_src>

<mosaic_0001>
module attributes {stable_mosaic.version = 11 : i64} {
  func.func @mlp_kernel(%arg0: i32, %arg1: memref<512x64xf32, #tpu.memory_space<vmem>>, %arg2: memref<64x128xf32, #tpu.memory_space<vmem>>, %arg3: memref<1x128xf32, #tpu.memory_space<vmem>>, %arg4: memref<128x128xf32, #tpu.memory_space<vmem>>, %arg5: memref<1x128xf32, #tpu.memory_space<vmem>>, %arg6: memref<512x128xf32, #tpu.memory_space<vmem>>) attributes {dimension_semantics = [#tpu.dimension_semantics<parallel>], iteration_bounds = array<i64: 1>, scalar_prefetch = 0 : i64, scratch_operands = 0 : i64, tpu.core_type = #tpu.core_type<tc>, window_params = [{transform_indices = @transform_0, window_bounds = array<i64: 512, 64>}, {pipeline_mode = #tpu.pipeline_mode<synchronous>, transform_indices = @transform_1, window_bounds = array<i64: 64, 128>}, {pipeline_mode = #tpu.pipeline_mode<synchronous>, transform_indices = @transform_2, window_bounds = array<i64: 1, 128>}, {pipeline_mode = #tpu.pipeline_mode<synchronous>, transform_indices = @transform_3, window_bounds = array<i64: 128, 128>}, {pipeline_mode = #tpu.pipeline_mode<synchronous>, transform_indices = @transform_4, window_bounds = array<i64: 1, 128>}, {transform_indices = @transform_5, window_bounds = array<i64: 512, 128>}]} {
    %c0 = arith.constant 0 : index
    %c0_0 = arith.constant 0 : index
    %0 = vector.load %arg1[%c0, %c0_0] : memref<512x64xf32, #tpu.memory_space<vmem>>, vector<512x64xf32>
    %c0_1 = arith.constant 0 : index
    %c0_2 = arith.constant 0 : index
    %1 = vector.load %arg2[%c0_1, %c0_2] : memref<64x128xf32, #tpu.memory_space<vmem>>, vector<64x128xf32>
    %cst = arith.constant dense<0.000000e+00> : vector<512x128xf32>
    %2 = tpu.matmul %0, %1, %cst {dimension_numbers = #tpu.dot_dimension_numbers<[1], [0], [0], [1], [0, 0, 1, 1], [], []>} : vector<512x64xf32>, vector<64x128xf32>, vector<512x128xf32> -> vector<512x128xf32>
    %c0_3 = arith.constant 0 : index
    %c0_4 = arith.constant 0 : index
    %3 = vector.load %arg3[%c0_3, %c0_4] : memref<1x128xf32, #tpu.memory_space<vmem>>, vector<1x128xf32>
    %4 = vector.broadcast %3 : vector<1x128xf32> to vector<512x128xf32>
    %5 = arith.addf %2, %4 : vector<512x128xf32>
    %cst_5 = arith.constant 0.000000e+00 : f32
    %6 = vector.broadcast %cst_5 : f32 to vector<512x128xf32>
    %7 = arith.maximumf %5, %6 : vector<512x128xf32>
    %c0_6 = arith.constant 0 : index
    %c0_7 = arith.constant 0 : index
    %8 = vector.load %arg4[%c0_6, %c0_7] : memref<128x128xf32, #tpu.memory_space<vmem>>, vector<128x128xf32>
    %cst_8 = arith.constant dense<0.000000e+00> : vector<512x128xf32>
    %9 = tpu.matmul %7, %8, %cst_8 {dimension_numbers = #tpu.dot_dimension_numbers<[1], [0], [0], [1], [0, 0, 1, 1], [], []>} : vector<512x128xf32>, vector<128x128xf32>, vector<512x128xf32> -> vector<512x128xf32>
    %c0_9 = arith.constant 0 : index
    %c0_10 = arith.constant 0 : index
    %10 = vector.load %arg5[%c0_9, %c0_10] : memref<1x128xf32, #tpu.memory_space<vmem>>, vector<1x128xf32>
    %11 = vector.broadcast %10 : vector<1x128xf32> to vector<512x128xf32>
    %12 = arith.addf %9, %11 : vector<512x128xf32>
    %c0_11 = arith.constant 0 : index
    %c0_12 = arith.constant 0 : index
    %13 = vector.load %arg6[%c0_11, %c0_12] : memref<512x128xf32, #tpu.memory_space<vmem>>, vector<512x128xf32>
    tpu.vector_store %arg6[%c0_11, %c0_12], %12 {strides = array<i32>} : memref<512x128xf32, #tpu.memory_space<vmem>>, vector<512x128xf32>,
    return
  }
  func.func @transform_0(%arg0: i32) -> (i32, i32) {
    %c0_i32 = arith.constant 0 : i32
    %c0_i32_0 = arith.constant 0 : i32
    return %arg0, %c0_i32 : i32, i32
  }
  func.func @transform_1(%arg0: i32) -> (i32, i32) {
    %c0_i32 = arith.constant 0 : i32
    %c0_i32_0 = arith.constant 0 : i32
    %c0_i32_1 = arith.constant 0 : i32
    return %c0_i32, %c0_i32_0 : i32, i32
  }
  func.func @transform_2(%arg0: i32) -> (i32, i32) {
    %c0_i32 = arith.constant 0 : i32
    %c0_i32_0 = arith.constant 0 : i32
    %c0_i32_1 = arith.constant 0 : i32
    return %c0_i32, %c0_i32_0 : i32, i32
  }
  func.func @transform_3(%arg0: i32) -> (i32, i32) {
    %c0_i32 = arith.constant 0 : i32
    %c0_i32_0 = arith.constant 0 : i32
    %c0_i32_1 = arith.constant 0 : i32
    return %c0_i32, %c0_i32_0 : i32, i32
  }
  func.func @transform_4(%arg0: i32) -> (i32, i32) {
    %c0_i32 = arith.constant 0 : i32
    %c0_i32_0 = arith.constant 0 : i32
    %c0_i32_1 = arith.constant 0 : i32
    return %c0_i32, %c0_i32_0 : i32, i32
  }
  func.func @transform_5(%arg0: i32) -> (i32, i32) {
    %c0_i32 = arith.constant 0 : i32
    %c0_i32_0 = arith.constant 0 : i32
    return %arg0, %c0_i32 : i32, i32
  }
}

</mosaic_0001>

<bundles_post_ra>
// kernel: tpu_custom_call.1
= control target key start
LH: loop header
LB: loop body
LE: loop exit
PB: predicated region body
PF: predicated region fallthrough
CT: control target
= control target key end

     0   :  { %s1511_s0 = inlined_call_operand.vmem [shape: f32[512,64], index: 0, kind: input, shape index: {}]   ;;  %s1512_s1 = inlined_call_operand.vmem [shape: f32[64,128], index: 1, kind: input, shape index: {}]   ;;  %s1513_s2 = inlined_call_operand.vmem [shape: f32[1,128], index: 2, kind: input, shape index: {}]   ;;  %s1514_s3 = inlined_call_operand.vmem [shape: f32[128,128], index: 3, kind: input, shape index: {}]   ;;  %s1515_s4 = inlined_call_operand.vmem [shape: f32[1,128], index: 4, kind: input, shape index: {}]   ;;  %s1516_s5 = inlined_call_operand.hbm [shape: f32[512,128], index: 5, kind: output, shape index: {}]  }
   0x1   :  { %v92_v0 = vld [vmem:[%s1512_s1 + $0x38] sm:$0xff]  ;;  %v91_v1 = vld [vmem:[%s1512_s1 + $0x30] sm:$0xff]  ;;  %v90_v2 = vld [vmem:[%s1512_s1 + $0x28] sm:$0xff] }
   0x2   :  { %298 = vmatpush.msra.mxu0 %v92_v0  ;;  %938 = vmatpush.msra.mxu3 %v92_v0  ;;  %v89_v3 = vld [vmem:[%s1512_s1 + $0x20] sm:$0xff] }
   0x4   :  { %299 = vmatpush.msra.mxu0 %v91_v1  ;;  %939 = vmatpush.msra.mxu3 %v91_v1 }
   0x5   :  { %10 = vsyncpa [#allocation3], 0  ;;  %v88_v4 = vld [vmem:[%s1512_s1 + $0x18] sm:$0xff]  ;;  %v87_v5 = vld [vmem:[%s1512_s1 + $0x10] sm:$0xff]  ;;  %vm97_vm0 = vcmask 523264   ;;  %s862_s10 = sshll.u32 %s1516_s5, 4  ;;  %s863_s10 = int_to_ptr.hbm [resolvable:$true] %s862_s10 }
   0x6   :  { %300 = vmatpush.msra.mxu0 %v90_v2  ;;  %940 = vmatpush.msra.mxu3 %v90_v2  ;;  %v86_v6 = vld [vmem:[%s1512_s1 + $0x8] sm:$0xff]  ;;  %v85_v7 = vld [vmem:[%s1512_s1] sm:$0xff]  ;;  %v23_v10 = vld [vmem:[%s1511_s0 + $0x10] sm:$0xff]  ;;  %s1010_s11 = smov 128   ;;  %s1011_s12 = smov 8  }
   0x7   :  { %v21_v8 = vld [vmem:[%s1511_s0] sm:$0xff]  ;;  %v22_v9 = vld [vmem:[%s1511_s0 + $0x8] sm:$0xff]  ;;  %v24_v11 = vld [vmem:[%s1511_s0 + $0x18] sm:$0xff] }
   0x8   :  { %301 = vmatpush.msra.mxu0 %v89_v3  ;;  %941 = vmatpush.msra.mxu3 %v89_v3  ;;  %v25_v12 = vld [vmem:[%s1511_s0 + $0x20] sm:$0xff]  ;;  %v26_v13 = vld [vmem:[%s1511_s0 + $0x28] sm:$0xff]  ;;  %v27_v14 = vld [vmem:[%s1511_s0 + $0x30] sm:$0xff] }
   0x9   :  { %v28_v15 = vld [vmem:[%s1511_s0 + $0x38] sm:$0xff]  ;;  %v29_v16 = vld [vmem:[%s1511_s0 + $0x40] sm:$0xff]  ;;  %v577_v18 = vld [vmem:[%s1514_s3 + $0x70] sm:$0xff] }
   0xa   :  { %302 = vmatpush.msra.mxu0 %v88_v4  ;;  %942 = vmatpush.msra.mxu3 %v88_v4  ;;  %v578_v17 = vld [vmem:[%s1514_s3 + $0x78] sm:$0xff]  ;;  %v576_v19 = vld [vmem:[%s1514_s3 + $0x68] sm:$0xff]  ;;  %v575_v21 = vld [vmem:[%s1514_s3 + $0x60] sm:$0xff] }
   0xb   :  { %583 = vmatpush.msra.mxu1 %v578_v17  ;;  %946 = vmatpush.msra.mxu2 %v578_v17  ;;  %v30_v20 = vld [vmem:[%s1511_s0 + $0x48] sm:$0xff]  ;;  %v574_v22 = vld [vmem:[%s1514_s3 + $0x58] sm:$0xff]  ;;  %v573_v23 = vld [vmem:[%s1514_s3 + $0x50] sm:$0xff] }
   0xc   :  { %303 = vmatpush.msra.mxu0 %v87_v5  ;;  %943 = vmatpush.msra.mxu3 %v87_v5  ;;  %v572_v24 = vld [vmem:[%s1514_s3 + $0x48] sm:$0xff]  ;;  %v31_v25 = vld [vmem:[%s1511_s0 + $0x50] sm:$0xff]  ;;  %v571_v26 = vld [vmem:[%s1514_s3 + $0x40] sm:$0xff] }
   0xd   :  { %584 = vmatpush.msra.mxu1 %v577_v18  ;;  %948 = vmatpush.msra.mxu2 %v577_v18  ;;  %v570_v27 = vld [vmem:[%s1514_s3 + $0x38] sm:$0xff]  ;;  %v569_v28 = vld [vmem:[%s1514_s3 + $0x30] sm:$0xff]  ;;  %v568_v29 = vld [vmem:[%s1514_s3 + $0x28] sm:$0xff] }
   0xe   :  { %304 = vmatpush.msra.mxu0 %v86_v6  ;;  %944 = vmatpush.msra.mxu3 %v86_v6  ;;  %v32_v30 = vld [vmem:[%s1511_s0 + $0x58] sm:$0xff]  ;;  %v567_v31 = vld [vmem:[%s1514_s3 + $0x20] sm:$0xff]  ;;  %v565_v33 = vld [vmem:[%s1514_s3 + $0x10] sm:$0xff] }
   0xf   :  { %585 = vmatpush.msra.mxu1 %v576_v19  ;;  %950 = vmatpush.msra.mxu2 %v576_v19  ;;  %v566_v32 = vld [vmem:[%s1514_s3 + $0x18] sm:$0xff]  ;;  %v33_v34 = vld [vmem:[%s1511_s0 + $0x60] sm:$0xff]  ;;  %v564_v35 = vld [vmem:[%s1514_s3 + $0x8] sm:$0xff] }
  0x10   :  { %305 = vmatpush.msra.mxu0 %v85_v7  ;;  %945 = vmatpush.msra.mxu3 %v85_v7  ;;  %v563_v36 = vld [vmem:[%s1514_s3] sm:$0xff]  ;;  %v34_v37 = vld [vmem:[%s1511_s0 + $0x68] sm:$0xff]  ;;  %v35_v38 = vld [vmem:[%s1511_s0 + $0x70] sm:$0xff] }
  0x11   :  { %874 = vmatmul.msk.f32.vlgmr.msra.gmra.mxu0 %vm97_vm0, %v21_v8  ;;  %586 = vmatpush.msra.mxu1 %v575_v21  ;;  %v36_v39 = vld [vmem:[%s1511_s0 + $0x78] sm:$0xff]  ;;  %v1181_v40 = vld [vmem:[%s1513_s2] ss:$0 sm:$0xff]  ;;  %v38_v46 = vld [vmem:[%s1511_s0 + $0x88] sm:$0xff] }
  0x12   :  { %947 = vmatpush.msrb.mxu3 %v578_v17  ;;  %952 = vmatpush.msra.mxu2 %v575_v21  ;;  %v37_v42 = vld [vmem:[%s1511_s0 + $0x80] sm:$0xff]  ;;  %v39_v50 = vld [vmem:[%s1511_s0 + $0x90] sm:$0xff]  ;;  %v40_v54 = vld [vmem:[%s1511_s0 + $0x98] sm:$0xff] }
  0x13   :  { %587 = vmatpush.msra.mxu1 %v574_v22  ;;  %v41_v58 = vld [vmem:[%s1511_s0 + $0xa0] sm:$0xff]  ;;  %v42_v62 = vld [vmem:[%s1511_s0 + $0xa8] sm:$0xff]  ;;  %v43_v2 = vld [vmem:[%s1511_s0 + $0xb0] sm:$0xff] }
  0x14   :  { %949 = vmatpush.msrb.mxu3 %v577_v18  ;;  %954 = vmatpush.msra.mxu2 %v574_v22  ;;  %v44_v6 = vld [vmem:[%s1511_s0 + $0xb8] sm:$0xff]  ;;  %v47_v18 = vld [vmem:[%s1511_s0 + $0xd0] sm:$0xff] }
  0x15   :  { %588 = vmatpush.msra.mxu1 %v573_v23 }
  0x16   :  { %951 = vmatpush.msrb.mxu3 %v576_v19  ;;  %956 = vmatpush.msra.mxu2 %v573_v23 }
  0x17   :  { %589 = vmatpush.msra.mxu1 %v572_v24 }
  0x18   :  { %953 = vmatpush.msrb.mxu3 %v575_v21  ;;  %958 = vmatpush.msra.mxu2 %v572_v24  ;;  %v54_v21 = vld [vmem:[%s1511_s0 + $0x108] sm:$0xff] }
  0x19   :  { %875 = vmatmul.msk.f32.gmra.mxu0 %vm97_vm0, %v22_v9  ;;  %590 = vmatpush.msra.mxu1 %v571_v26 }
  0x1a   :  { %955 = vmatpush.msrb.mxu3 %v574_v22  ;;  %960 = vmatpush.msra.mxu2 %v571_v26 }
  0x1b   :  { %591 = vmatpush.msra.mxu1 %v570_v27  ;;  %907 = vmatmul.msk.f32.vlgmr.msra.gmra.mxu3 %vm97_vm0, %v54_v21  ;;  %v65_v21 = vld [vmem:[%s1511_s0 + $0x160] sm:$0xff] }
  0x1c   :  { %957 = vmatpush.msrb.mxu3 %v573_v23  ;;  %962 = vmatpush.msra.mxu2 %v570_v27  ;;  %v48_v23 = vld [vmem:[%s1511_s0 + $0xd8] sm:$0xff] }
  0x1d   :  { %592 = vmatpush.msra.mxu1 %v569_v28 }
  0x1e   :  { %959 = vmatpush.msrb.mxu3 %v572_v24  ;;  %964 = vmatpush.msra.mxu2 %v569_v28 }
  0x1f   :  { %593 = vmatpush.msra.mxu1 %v568_v29 }
  0x20   :  { %961 = vmatpush.msrb.mxu3 %v571_v26  ;;  %966 = vmatpush.msra.mxu2 %v568_v29  ;;  %v55_v26 = vld [vmem:[%s1511_s0 + $0x110] sm:$0xff] }
  0x21   :  { %876 = vmatmul.msk.f32.gmra.mxu0 %vm97_vm0, %v23_v10  ;;  %594 = vmatpush.msra.mxu1 %v567_v31  ;;  %v45_v10 = vld [vmem:[%s1511_s0 + $0xc0] sm:$0xff] }
  0x22   :  { %963 = vmatpush.msrb.mxu3 %v570_v27  ;;  %968 = vmatpush.msra.mxu2 %v567_v31 }
  0x23   :  { %595 = vmatpush.msra.mxu1 %v566_v32  ;;  %908 = vmatmul.msk.f32.gmra.mxu3 %vm97_vm0, %v55_v26 }
  0x24   :  { %965 = vmatpush.msrb.mxu3 %v569_v28  ;;  %970 = vmatpush.msra.mxu2 %v566_v32  ;;  %v49_v28 = vld [vmem:[%s1511_s0 + $0xe0] sm:$0xff] }
  0x25   :  { %596 = vmatpush.msra.mxu1 %v565_v33 }
  0x26   :  { %967 = vmatpush.msrb.mxu3 %v568_v29  ;;  %972 = vmatpush.msra.mxu2 %v565_v33 }
  0x27   :  { %597 = vmatpush.msra.mxu1 %v564_v35 }
  0x28   :  { %969 = vmatpush.msrb.mxu3 %v567_v31  ;;  %974 = vmatpush.msra.mxu2 %v564_v35  ;;  %v56_v31 = vld [vmem:[%s1511_s0 + $0x118] sm:$0xff] }
  0x29   :  { %877 = vmatmul.msk.f32.gmra.mxu0 %vm97_vm0, %v24_v11  ;;  %598 = vmatpush.msra.mxu1 %v563_v36 }
  0x2a   :  { %971 = vmatpush.msrb.mxu3 %v566_v32  ;;  %976 = vmatpush.msra.mxu2 %v563_v36 }
  0x2b   :  { %909 = vmatmul.msk.f32.gmra.mxu3 %vm97_vm0, %v56_v31 }
  0x2c   :  { %973 = vmatpush.msrb.mxu3 %v565_v33  ;;  %v50_v33 = vld [vmem:[%s1511_s0 + $0xe8] sm:$0xff] }
  0x2e   :  { %975 = vmatpush.msrb.mxu3 %v564_v35 }
  0x30   :  { %977 = vmatpush.msrb.mxu3 %v563_v36  ;;  %v57_v36 = vld [vmem:[%s1511_s0 + $0x120] sm:$0xff] }
  0x31   :  { %878 = vmatmul.msk.f32.gmra.mxu0 %vm97_vm0, %v25_v12 }
  0x33   :  { %910 = vmatmul.msk.f32.gmra.mxu3 %vm97_vm0, %v57_v36 }
  0x39   :  { %879 = vmatmul.msk.f32.gmra.mxu0 %vm97_vm0, %v26_v13 }
  0x41   :  { %880 = vmatmul.msk.f32.gmra.mxu0 %vm97_vm0, %v27_v14  ;;  %v46_v14 = vld [vmem:[%s1511_s0 + $0xc8] sm:$0xff] }
  0x49   :  { %881 = vmatmul.msk.f32.gmra.mxu0 %vm97_vm0, %v28_v15 }
  0x51   :  { %882 = vmatmul.msk.f32.gmra.mxu0 %vm97_vm0, %v29_v16 }
  0x59   :  { %883 = vmatmul.msk.f32.gmra.mxu0 %vm97_vm0, %v30_v20 }
  0x61   :  { %884 = vmatmul.msk.f32.gmra.mxu0 %vm97_vm0, %v31_v25 }
  0x69   :  { %885 = vmatmul.msk.f32.gmra.mxu0 %vm97_vm0, %v32_v30 }
  0x71   :  { %886 = vmatmul.msk.f32.gmra.mxu0 %vm97_vm0, %v33_v34 }
  0x79   :  { %887 = vmatmul.msk.f32.gmra.mxu0 %vm97_vm0, %v34_v37 }
  0x81   :  { %888 = vmatmul.msk.f32.gmra.mxu0 %vm97_vm0, %v35_v38  ;;  %v51_v38 = vld [vmem:[%s1511_s0 + $0xf0] sm:$0xff] }
  0x89   :  { %889 = vmatmul.msk.f32.gmra.mxu0 %vm97_vm0, %v36_v39 }
  0x8e   :  { %v307_v41 = vpop.f32.mrf.mxu0 }
  0x8f   :  { %v308_v43 = vadd.f32 %v1181_v40, %v307_v41 }
  0x91   :  { %890 = vmatmul.msk.f32.gmra.mxu0 %vm97_vm0, %v37_v42  ;;  %v499_v44 = vmax.f32 %v308_v43, 0.0  ;;  %v58_v42 = vld [vmem:[%s1511_s0 + $0x128] sm:$0xff] }
  0x92   :  { %911 = vmatmul.msk.f32.gmra.mxu3 %vm97_vm0, %v58_v42 }
  0x93   :  { %599 = vmatmul.f32.vlgmr.msra.gmra.mxu1 %v499_v44  ;;  %v52_v44 = vld [vmem:[%s1511_s0 + $0xf8] sm:$0xff] }
  0x96   :  { %v310_v45 = vpop.f32.mrf.mxu0 }
  0x97   :  { %v311_v47 = vadd.f32 %v1181_v40, %v310_v45 }
  0x99   :  { %891 = vmatmul.msk.f32.gmra.mxu0 %vm97_vm0, %v38_v46  ;;  %v500_v48 = vmax.f32 %v311_v47, 0.0  ;;  %v59_v47 = vld [vmem:[%s1511_s0 + $0x130] sm:$0xff] }
  0x9a   :  { %912 = vmatmul.msk.f32.gmra.mxu3 %vm97_vm0, %v59_v47 }
  0x9b   :  { %602 = vmatmul.f32.gmra.mxu1 %v500_v48  ;;  %v1290_v48 = vld [vmem:[%s1515_s4] ss:$0 sm:$0xff] }
  0x9e   :  { %v313_v49 = vpop.f32.mrf.mxu0 }
  0x9f   :  { %v314_v51 = vadd.f32 %v1181_v40, %v313_v49 }
  0xa1   :  { %892 = vmatmul.msk.f32.gmra.mxu0 %vm97_vm0, %v39_v50  ;;  %v501_v52 = vmax.f32 %v314_v51, 0.0  ;;  %v53_v50 = vld [vmem:[%s1511_s0 + $0x100] sm:$0xff] }
  0xa3   :  { %605 = vmatmul.f32.gmra.mxu1 %v501_v52 }
  0xa6   :  { %v316_v53 = vpop.f32.mrf.mxu0 }
  0xa7   :  { %v317_v55 = vadd.f32 %v1181_v40, %v316_v53 }
  0xa9   :  { %893 = vmatmul.msk.f32.gmra.mxu0 %vm97_vm0, %v40_v54  ;;  %v502_v56 = vmax.f32 %v317_v55, 0.0  ;;  %v60_v55 = vld [vmem:[%s1511_s0 + $0x138] sm:$0xff] }
  0xaa   :  { %913 = vmatmul.msk.f32.gmra.mxu3 %vm97_vm0, %v60_v55  ;;  %v406_v55 = vpop.f32.mrf.mxu3 }
  0xab   :  { %608 = vmatmul.f32.gmra.mxu1 %v502_v56 }
  0xae   :  { %v319_v57 = vpop.f32.mrf.mxu0 }
  0xaf   :  { %v320_v59 = vadd.f32 %v1181_v40, %v319_v57 }
  0xb1   :  { %894 = vmatmul.msk.f32.gmra.mxu0 %vm97_vm0, %v41_v58  ;;  %v503_v60 = vmax.f32 %v320_v59, 0.0 }
  0xb3   :  { %611 = vmatmul.f32.gmra.mxu1 %v503_v60 }
  0xb6   :  { %v322_v61 = vpop.f32.mrf.mxu0 }
  0xb7   :  { %v323_v63 = vadd.f32 %v1181_v40, %v322_v61  ;;  %v61_v61 = vld [vmem:[%s1511_s0 + $0x140] sm:$0xff] }
  0xb8   :  { %914 = vmatmul.msk.f32.gmra.mxu3 %vm97_vm0, %v61_v61 }
  0xb9   :  { %895 = vmatmul.msk.f32.gmra.mxu0 %vm97_vm0, %v42_v62  ;;  %v504_v0 = vmax.f32 %v323_v63, 0.0 }
  0xbb   :  { %614 = vmatmul.f32.gmra.mxu1 %v504_v0 }
  0xbe   :  { %v325_v1 = vpop.f32.mrf.mxu0 }
  0xbf   :  { %v326_v3 = vadd.f32 %v1181_v40, %v325_v1 }
  0xc1   :  { %896 = vmatmul.msk.f32.gmra.mxu0 %vm97_vm0, %v43_v2  ;;  %v505_v4 = vmax.f32 %v326_v3, 0.0  ;;  %v62_v3 = vld [vmem:[%s1511_s0 + $0x148] sm:$0xff] }
  0xc2   :  { %915 = vmatmul.msk.f32.gmra.mxu3 %vm97_vm0, %v62_v3  ;;  %v72_v3 = vld [vmem:[%s1511_s0 + $0x198] sm:$0xff] }
  0xc3   :  { %617 = vmatmul.f32.gmra.mxu1 %v505_v4 }
  0xc6   :  { %v328_v5 = vpop.f32.mrf.mxu0 }
  0xc7   :  { %v329_v7 = vadd.f32 %v1181_v40, %v328_v5 }
  0xc9   :  { %897 = vmatmul.msk.f32.gmra.mxu0 %vm97_vm0, %v44_v6  ;;  %v506_v8 = vmax.f32 %v329_v7, 0.0 }
  0xcb   :  { %620 = vmatmul.f32.gmra.mxu1 %v506_v8 }
  0xce   :  { %v331_v9 = vpop.f32.mrf.mxu0 }
  0xcf   :  { %v332_v11 = vadd.f32 %v1181_v40, %v331_v9  ;;  %v63_v9 = vld [vmem:[%s1511_s0 + $0x150] sm:$0xff] }
  0xd0   :  { %916 = vmatmul.msk.f32.gmra.mxu3 %vm97_vm0, %v63_v9 }
  0xd1   :  { %898 = vmatmul.msk.f32.gmra.mxu0 %vm97_vm0, %v45_v10  ;;  %v507_v12 = vmax.f32 %v332_v11, 0.0 }
  0xd3   :  { %623 = vmatmul.f32.gmra.mxu1 %v507_v12 }
  0xd6   :  { %v334_v13 = vpop.f32.mrf.mxu0 }
  0xd7   :  { %v335_v15 = vadd.f32 %v1181_v40, %v334_v13 }
  0xd9   :  { %v508_v16 = vmax.f32 %v335_v15, 0.0  ;;  %899 = vmatmul.msk.f32.gmra.mxu0 %vm97_vm0, %v46_v14  ;;  %v64_v15 = vld [vmem:[%s1511_s0 + $0x158] sm:$0xff] }
  0xda   :  { %917 = vmatmul.msk.f32.gmra.mxu3 %vm97_vm0, %v64_v15 }
  0xdb   :  { %626 = vmatmul.f32.gmra.mxu1 %v508_v16 }
  0xde   :  { %v337_v17 = vpop.f32.mrf.mxu0 }
  0xdf   :  { %v338_v19 = vadd.f32 %v1181_v40, %v337_v17 }
  0xe1   :  { %v509_v20 = vmax.f32 %v338_v19, 0.0  ;;  %900 = vmatmul.msk.f32.gmra.mxu0 %vm97_vm0, %v47_v18 }
  0xe2   :  { %918 = vmatmul.msk.f32.gmra.mxu3 %vm97_vm0, %v65_v21 }
  0xe3   :  { %629 = vmatmul.f32.gmra.mxu1 %v509_v20 }
  0xe6   :  { %v340_v22 = vpop.f32.mrf.mxu0 }
  0xe7   :  { %v341_v24 = vadd.f32 %v1181_v40, %v340_v22 }
  0xe9   :  { %v510_v25 = vmax.f32 %v341_v24, 0.0  ;;  %901 = vmatmul.msk.f32.gmra.mxu0 %vm97_vm0, %v48_v23 }
  0xeb   :  { %632 = vmatmul.f32.gmra.mxu1 %v510_v25 }
  0xee   :  { %v343_v27 = vpop.f32.mrf.mxu0 }
  0xef   :  { %v344_v29 = vadd.f32 %v1181_v40, %v343_v27  ;;  %v66_v27 = vld [vmem:[%s1511_s0 + $0x168] sm:$0xff] }
  0xf0   :  { %919 = vmatmul.msk.f32.gmra.mxu3 %vm97_vm0, %v66_v27 }
  0xf1   :  { %v511_v30 = vmax.f32 %v344_v29, 0.0  ;;  %902 = vmatmul.msk.f32.gmra.mxu0 %vm97_vm0, %v49_v28 }
  0xf3   :  { %635 = vmatmul.f32.gmra.mxu1 %v511_v30 }
  0xf6   :  { %v346_v32 = vpop.f32.mrf.mxu0 }
  0xf7   :  { %v347_v34 = vadd.f32 %v1181_v40, %v346_v32 }
  0xf9   :  { %v512_v35 = vmax.f32 %v347_v34, 0.0  ;;  %903 = vmatmul.msk.f32.gmra.mxu0 %vm97_vm0, %v50_v33  ;;  %v67_v33 = vld [vmem:[%s1511_s0 + $0x170] sm:$0xff] }
  0xfa   :  { %920 = vmatmul.msk.f32.gmra.mxu3 %vm97_vm0, %v67_v33 }
  0xfb   :  { %638 = vmatmul.f32.gmra.mxu1 %v512_v35 }
  0xfe   :  { %v349_v37 = vpop.f32.mrf.mxu0 }
  0xff   :  { %v350_v39 = vadd.f32 %v1181_v40, %v349_v37 }
 0x101   :  { %v513_v41 = vmax.f32 %v350_v39, 0.0  ;;  %904 = vmatmul.msk.f32.gmra.mxu0 %vm97_vm0, %v51_v38  ;;  %v68_v39 = vld [vmem:[%s1511_s0 + $0x178] sm:$0xff] }
 0x102   :  { %921 = vmatmul.msk.f32.gmra.mxu3 %vm97_vm0, %v68_v39 }
 0x103   :  { %641 = vmatmul.f32.gmra.mxu1 %v513_v41 }
 0x106   :  { %v352_v43 = vpop.f32.mrf.mxu0 }
 0x107   :  { %v353_v45 = vadd.f32 %v1181_v40, %v352_v43 }
 0x109   :  { %v514_v46 = vmax.f32 %v353_v45, 0.0  ;;  %905 = vmatmul.msk.f32.gmra.mxu0 %vm97_vm0, %v52_v44 }
 0x10b   :  { %644 = vmatmul.f32.gmra.mxu1 %v514_v46  ;;  %v69_v46 = vld [vmem:[%s1511_s0 + $0x180] sm:$0xff] }
 0x10c   :  { %922 = vmatmul.msk.f32.gmra.mxu3 %vm97_vm0, %v69_v46 }
 0x10e   :  { %v355_v49 = vpop.f32.mrf.mxu0 }
 0x10f   :  { %v356_v51 = vadd.f32 %v1181_v40, %v355_v49 }
 0x110   :  { %v600_v52 = vpop.f32.mrf.mxu1 }
 0x111   :  { %v515_v53 = vmax.f32 %v356_v51, 0.0  ;;  %v601_v54 = vadd.f32 %v1290_v48, %v600_v52  ;;  %906 = vmatmul.msk.f32.gmra.mxu0 %vm97_vm0, %v53_v50 }
 0x113   :  { %792 = vst [vmem:[#allocation2] sm:$0xff] %v601_v54  ;;  %647 = vmatmul.f32.gmra.mxu1 %v515_v53  ;;  %v70_v53 = vld [vmem:[%s1511_s0 + $0x188] sm:$0xff] }
 0x114   :  { %923 = vmatmul.msk.f32.gmra.mxu3 %vm97_vm0, %v70_v53 }
 0x116   :  { %v358_v56 = vpop.f32.mrf.mxu0 }
 0x117   :  { %v359_v57 = vadd.f32 %v1181_v40, %v358_v56 }
 0x118   :  { %v603_v58 = vpop.f32.mrf.mxu1 }
 0x119   :  { %v516_v59 = vmax.f32 %v359_v57, 0.0  ;;  %v604_v60 = vadd.f32 %v1290_v48, %v603_v58 }
 0x11b   :  { %793 = vst [vmem:[#allocation2 + $0x8] sm:$0xff] %v604_v60  ;;  %650 = vmatmul.f32.gmra.mxu1 %v516_v59  ;;  %v71_v60 = vld [vmem:[%s1511_s0 + $0x190] sm:$0xff] }
 0x11c   :  { %924 = vmatmul.msk.f32.gmra.mxu3 %vm97_vm0, %v71_v60 }
 0x11e   :  { %v361_v62 = vpop.f32.mrf.mxu0 }
 0x11f   :  { %v362_v63 = vadd.f32 %v1181_v40, %v361_v62  ;;  %v409_v62 = vpop.f32.mrf.mxu3 }
 0x120   :  { %v606_v0 = vpop.f32.mrf.mxu1 }
 0x121   :  { %v517_v1 = vmax.f32 %v362_v63, 0.0  ;;  %v607_v2 = vadd.f32 %v1290_v48, %v606_v0 }
 0x123   :  { %794 = vst [vmem:[#allocation2 + $0x10] sm:$0xff] %v607_v2  ;;  %653 = vmatmul.f32.gmra.mxu1 %v517_v1 }
 0x124   :  { %925 = vmatmul.msk.f32.gmra.mxu3 %vm97_vm0, %v72_v3 }
 0x126   :  { %v364_v4 = vpop.f32.mrf.mxu0 }
 0x127   :  { %v365_v5 = vadd.f32 %v1181_v40, %v364_v4 }
 0x128   :  { %v609_v6 = vpop.f32.mrf.mxu1 }
 0x129   :  { %v518_v7 = vmax.f32 %v365_v5, 0.0  ;;  %v610_v8 = vadd.f32 %v1290_v48, %v609_v6  ;;  %v412_v5 = vpop.f32.mrf.mxu3 }
 0x12b   :  { %795 = vst [vmem:[#allocation2 + $0x18] sm:$0xff] %v610_v8  ;;  %656 = vmatmul.f32.gmra.mxu1 %v518_v7 }
 0x12e   :  { %v367_v10 = vpop.f32.mrf.mxu0 }
 0x12f   :  { %v368_v11 = vadd.f32 %v1181_v40, %v367_v10  ;;  %v73_v10 = vld [vmem:[%s1511_s0 + $0x1a0] sm:$0xff] }
 0x130   :  { %v612_v12 = vpop.f32.mrf.mxu1  ;;  %926 = vmatmul.msk.f32.gmra.mxu3 %vm97_vm0, %v73_v10 }
 0x131   :  { %v519_v13 = vmax.f32 %v368_v11, 0.0  ;;  %v613_v14 = vadd.f32 %v1290_v48, %v612_v12  ;;  %v415_v12 = vpop.f32.mrf.mxu3 }
 0x133   :  { %796 = vst [vmem:[#allocation2 + $0x20] sm:$0xff] %v613_v14  ;;  %659 = vmatmul.f32.gmra.mxu1 %v519_v13 }
 0x136   :  { %v370_v16 = vpop.f32.mrf.mxu0 }
 0x137   :  { %v371_v17 = vadd.f32 %v1181_v40, %v370_v16 }
 0x138   :  { %v615_v18 = vpop.f32.mrf.mxu1 }
 0x139   :  { %v520_v19 = vmax.f32 %v371_v17, 0.0  ;;  %v616_v20 = vadd.f32 %v1290_v48, %v615_v18  ;;  %v74_v17 = vld [vmem:[%s1511_s0 + $0x1a8] sm:$0xff] }
 0x13a   :  { %927 = vmatmul.msk.f32.gmra.mxu3 %vm97_vm0, %v74_v17  ;;  %v84_v17 = vld [vmem:[%s1511_s0 + $0x1f8] sm:$0xff] }
 0x13b   :  { %797 = vst [vmem:[#allocation2 + $0x28] sm:$0xff] %v616_v20  ;;  %662 = vmatmul.f32.gmra.mxu1 %v520_v19  ;;  %v418_v19 = vpop.f32.mrf.mxu3 }
 0x13e   :  { %v373_v22 = vpop.f32.mrf.mxu0 }
 0x13f   :  { %v374_v23 = vadd.f32 %v1181_v40, %v373_v22 }
 0x140   :  { %v618_v24 = vpop.f32.mrf.mxu1 }
 0x141   :  { %v521_v25 = vmax.f32 %v374_v23, 0.0  ;;  %v619_v26 = vadd.f32 %v1290_v48, %v618_v24  ;;  %v75_v24 = vld [vmem:[%s1511_s0 + $0x1b0] sm:$0xff] }
 0x142   :  { %928 = vmatmul.msk.f32.gmra.mxu3 %vm97_vm0, %v75_v24 }
 0x143   :  { %798 = vst [vmem:[#allocation2 + $0x30] sm:$0xff] %v619_v26  ;;  %665 = vmatmul.f32.gmra.mxu1 %v521_v25  ;;  %v421_v26 = vpop.f32.mrf.mxu3 }
 0x146   :  { %v376_v28 = vpop.f32.mrf.mxu0 }
 0x147   :  { %v377_v29 = vadd.f32 %v1181_v40, %v376_v28 }
 0x148   :  { %v621_v30 = vpop.f32.mrf.mxu1 }
 0x149   :  { %v522_v31 = vmax.f32 %v377_v29, 0.0  ;;  %v622_v32 = vadd.f32 %v1290_v48, %v621_v30 }
 0x14b   :  { %799 = vst [vmem:[#allocation2 + $0x38] sm:$0xff] %v622_v32  ;;  %668 = vmatmul.f32.gmra.mxu1 %v522_v31  ;;  %v76_v31 = vld [vmem:[%s1511_s0 + $0x1b8] sm:$0xff]  ;;  %v407_v32 = vadd.f32 %v1181_v40, %v406_v55  ;;  %v424_v33 = vpop.f32.mrf.mxu3 }
 0x14c   :  { %929 = vmatmul.msk.f32.gmra.mxu3 %vm97_vm0, %v76_v31 }
 0x14e   :  { %v379_v34 = vpop.f32.mrf.mxu0 }
 0x14f   :  { %v380_v35 = vadd.f32 %v1181_v40, %v379_v34 }
 0x150   :  { %v624_v36 = vpop.f32.mrf.mxu1 }
 0x151   :  { %v523_v37 = vmax.f32 %v380_v35, 0.0  ;;  %v625_v38 = vadd.f32 %v1290_v48, %v624_v36  ;;  %v532_v36 = vmax.f32 %v407_v32, 0.0 }
 0x153   :  { %800 = vst [vmem:[#allocation2 + $0x40] sm:$0xff] %v625_v38  ;;  %671 = vmatmul.f32.gmra.mxu1 %v523_v37  ;;  %v77_v37 = vld [vmem:[%s1511_s0 + $0x1c0] sm:$0xff]  ;;  %v410_v38 = vadd.f32 %v1181_v40, %v409_v62  ;;  %v427_v39 = vpop.f32.mrf.mxu3 }
 0x154   :  { %930 = vmatmul.msk.f32.gmra.mxu3 %vm97_vm0, %v77_v37 }
 0x156   :  { %v382_v41 = vpop.f32.mrf.mxu0 }
 0x157   :  { %v383_v42 = vadd.f32 %v1181_v40, %v382_v41 }
 0x158   :  { %v627_v43 = vpop.f32.mrf.mxu1 }
 0x159   :  { %v524_v44 = vmax.f32 %v383_v42, 0.0  ;;  %v628_v45 = vadd.f32 %v1290_v48, %v627_v43  ;;  %v533_v43 = vmax.f32 %v410_v38, 0.0 }
 0x15b   :  { %801 = vst [vmem:[#allocation2 + $0x48] sm:$0xff] %v628_v45  ;;  %674 = vmatmul.f32.gmra.mxu1 %v524_v44  ;;  %v78_v44 = vld [vmem:[%s1511_s0 + $0x1c8] sm:$0xff]  ;;  %v413_v45 = vadd.f32 %v1181_v40, %v412_v5  ;;  %v430_v46 = vpop.f32.mrf.mxu3 }
 0x15c   :  { %931 = vmatmul.msk.f32.gmra.mxu3 %vm97_vm0, %v78_v44  ;;  %v82_v5 = vld [vmem:[%s1511_s0 + $0x1e8] sm:$0xff] }
 0x15e   :  { %v385_v47 = vpop.f32.mrf.mxu0 }
 0x15f   :  { %v386_v49 = vadd.f32 %v1181_v40, %v385_v47 }
 0x160   :  { %v630_v50 = vpop.f32.mrf.mxu1 }
 0x161   :  { %v525_v51 = vmax.f32 %v386_v49, 0.0  ;;  %v631_v52 = vadd.f32 %v1290_v48, %v630_v50  ;;  %v534_v50 = vmax.f32 %v413_v45, 0.0 }
 0x163   :  { %802 = vst [vmem:[#allocation2 + $0x50] sm:$0xff] %v631_v52  ;;  %677 = vmatmul.f32.gmra.mxu1 %v525_v51  ;;  %v79_v51 = vld [vmem:[%s1511_s0 + $0x1d0] sm:$0xff]  ;;  %v416_v52 = vadd.f32 %v1181_v40, %v415_v12  ;;  %v433_v53 = vpop.f32.mrf.mxu3  ;;  %v428_v12 = vadd.f32 %v1181_v40, %v427_v39 }
 0x164   :  { %932 = vmatmul.msk.f32.gmra.mxu3 %vm97_vm0, %v79_v51 }
 0x166   :  { %v388_v54 = vpop.f32.mrf.mxu0 }
 0x167   :  { %v389_v56 = vadd.f32 %v1181_v40, %v388_v54 }
 0x168   :  { %v633_v57 = vpop.f32.mrf.mxu1 }
 0x169   :  { %v526_v58 = vmax.f32 %v389_v56, 0.0  ;;  %v634_v59 = vadd.f32 %v1290_v48, %v633_v57  ;;  %v535_v56 = vmax.f32 %v416_v52, 0.0  ;;  %v80_v57 = vld [vmem:[%s1511_s0 + $0x1d8] sm:$0xff] }
 0x16b   :  { %803 = vst [vmem:[#allocation2 + $0x58] sm:$0xff] %v634_v59  ;;  %680 = vmatmul.f32.gmra.mxu1 %v526_v58  ;;  %v419_v58 = vadd.f32 %v1181_v40, %v418_v19  ;;  %v436_v59 = vpop.f32.mrf.mxu3 }
 0x16c   :  { %933 = vmatmul.msk.f32.gmra.mxu3 %vm97_vm0, %v80_v57 }
 0x16d   :  { %v536_v62 = vmax.f32 %v419_v58, 0.0 }
 0x16e   :  { %v391_v61 = vpop.f32.mrf.mxu0 }
 0x16f   :  { %v392_v63 = vadd.f32 %v1181_v40, %v391_v61 }
 0x170   :  { %v636_v0 = vpop.f32.mrf.mxu1 }
 0x171   :  { %v527_v1 = vmax.f32 %v392_v63, 0.0  ;;  %v637_v2 = vadd.f32 %v1290_v48, %v636_v0  ;;  %v81_v63 = vld [vmem:[%s1511_s0 + $0x1e0] sm:$0xff]  ;;  %v422_v0 = vadd.f32 %v1181_v40, %v421_v26 }
 0x173   :  { %804 = vst [vmem:[#allocation2 + $0x60] sm:$0xff] %v637_v2  ;;  %683 = vmatmul.f32.gmra.mxu1 %v527_v1  ;;  %v439_v1 = vpop.f32.mrf.mxu3 }
 0x174   :  { %934 = vmatmul.msk.f32.gmra.mxu3 %vm97_vm0, %v81_v63 }
 0x176   :  { %v394_v4 = vpop.f32.mrf.mxu0 }
 0x177   :  { %v395_v6 = vadd.f32 %v1181_v40, %v394_v4  ;;  %v537_v4 = vmax.f32 %v422_v0, 0.0 }
 0x178   :  { %v639_v7 = vpop.f32.mrf.mxu1 }
 0x179   :  { %v528_v8 = vmax.f32 %v395_v6, 0.0  ;;  %v640_v9 = vadd.f32 %v1290_v48, %v639_v7  ;;  %v425_v6 = vadd.f32 %v1181_v40, %v424_v33  ;;  %v440_v33 = vadd.f32 %v1181_v40, %v439_v1 }
 0x17b   :  { %805 = vst [vmem:[#allocation2 + $0x68] sm:$0xff] %v640_v9  ;;  %686 = vmatmul.f32.gmra.mxu1 %v528_v8  ;;  %v442_v7 = vpop.f32.mrf.mxu3  ;;  %v538_v10 = vmax.f32 %v425_v6, 0.0 }
 0x17c   :  { %935 = vmatmul.msk.f32.gmra.mxu3 %vm97_vm0, %v82_v5  ;;  %v443_v38 = vadd.f32 %v1181_v40, %v442_v7 }
 0x17e   :  { %v397_v11 = vpop.f32.mrf.mxu0 }
 0x17f   :  { %v398_v13 = vadd.f32 %v1181_v40, %v397_v11  ;;  %v83_v11 = vld [vmem:[%s1511_s0 + $0x1f0] sm:$0xff]  ;;  %s1009_s0 = smov [#allocation2]  }
 0x180   :  { %v642_v14 = vpop.f32.mrf.mxu1  ;;  %s860_s7 = sshll.u32 %s1009_s0, 4  ;;  %s861_s7 = int_to_ptr.vmem [resolvable:$true] %s860_s7 }
 0x181   :  { %v529_v15 = vmax.f32 %v398_v13, 0.0  ;;  %v643_v16 = vadd.f32 %v1290_v48, %v642_v14 }
 0x183   :  { %806 = vst [vmem:[#allocation2 + $0x70] sm:$0xff] %v643_v16  ;;  %689 = vmatmul.f32.gmra.mxu1 %v529_v15  ;;  %v445_v13 = vpop.f32.mrf.mxu3  ;;  %v539_v16 = vmax.f32 %v428_v12, 0.0 }
 0x184   :  { %936 = vmatmul.msk.f32.gmra.mxu3 %vm97_vm0, %v83_v11  ;;  %v446_v44 = vadd.f32 %v1181_v40, %v445_v13 }
 0x186   :  { %v400_v18 = vpop.f32.mrf.mxu0 }
 0x187   :  { %v401_v20 = vadd.f32 %v1181_v40, %v400_v18  ;;  %v431_v18 = vadd.f32 %v1181_v40, %v430_v46 }
 0x188   :  { %v645_v21 = vpop.f32.mrf.mxu1 }
 0x189   :  { %v530_v22 = vmax.f32 %v401_v20, 0.0  ;;  %v646_v23 = vadd.f32 %v1290_v48, %v645_v21 }
 0x18b   :  { %807 = vst [vmem:[#allocation2 + $0x78] sm:$0xff] %v646_v23  ;;  %692 = vmatmul.f32.vlgmr.msra.gmra.mxu2 %v530_v22  ;;  %v448_v19 = vpop.f32.mrf.mxu3  ;;  %v540_v22 = vmax.f32 %v431_v18, 0.0  ;;  %v434_v23 = vadd.f32 %v1181_v40, %v433_v53 }
 0x18c   :  { %937 = vmatmul.msk.f32.gmra.mxu3 %vm97_vm0, %v84_v17 }
 0x18d   :  { %v541_v26 = vmax.f32 %v434_v23, 0.0 }
 0x18e   :  { %v403_v25 = vpop.f32.mrf.mxu0 }
 0x18f   :  { %v404_v27 = vadd.f32 %v1181_v40, %v403_v25 }
 0x190   :  { %v648_v28 = vpop.f32.mrf.mxu1 }
 0x191   :  { %v531_v29 = vmax.f32 %v404_v27, 0.0  ;;  %v649_v30 = vadd.f32 %v1290_v48, %v648_v28  ;;  %v437_v28 = vadd.f32 %v1181_v40, %v436_v59 }
 0x193   :  { %808 = vst [vmem:[#allocation2 + $0x80] sm:$0xff] %v649_v30  ;;  %695 = vmatmul.f32.gmra.mxu2 %v531_v29  ;;  %v451_v24 = vpop.f32.mrf.mxu3  ;;  %v542_v31 = vmax.f32 %v437_v28, 0.0 }
 0x194   :  { %v452_v53 = vadd.f32 %v1181_v40, %v451_v24 }
 0x196   :  { %v547_v57 = vmax.f32 %v452_v53, 0.0 }
 0x198   :  { %v651_v34 = vpop.f32.mrf.mxu1 }
 0x199   :  { %v652_v35 = vadd.f32 %v1290_v48, %v651_v34 }
 0x19b   :  { %809 = vst [vmem:[#allocation2 + $0x88] sm:$0xff] %v652_v35  ;;  %698 = vmatmul.f32.gmra.mxu2 %v532_v36  ;;  %v454_v29 = vpop.f32.mrf.mxu3  ;;  %v543_v36 = vmax.f32 %v440_v33, 0.0 }
 0x19c   :  { %v455_v58 = vadd.f32 %v1181_v40, %v454_v29 }
 0x1a0   :  { %v654_v41 = vpop.f32.mrf.mxu1 }
 0x1a1   :  { %v655_v42 = vadd.f32 %v1290_v48, %v654_v41 }
 0x1a3   :  { %810 = vst [vmem:[#allocation2 + $0x90] sm:$0xff] %v655_v42  ;;  %701 = vmatmul.f32.gmra.mxu2 %v533_v43  ;;  %v457_v34 = vpop.f32.mrf.mxu3  ;;  %v544_v42 = vmax.f32 %v443_v38, 0.0 }
 0x1a4   :  { %v458_v63 = vadd.f32 %v1181_v40, %v457_v34 }
 0x1a8   :  { %v657_v47 = vpop.f32.mrf.mxu1 }
 0x1a9   :  { %v658_v49 = vadd.f32 %v1290_v48, %v657_v47  ;;  %v545_v47 = vmax.f32 %v446_v44, 0.0 }
 0x1ab   :  { %811 = vst [vmem:[#allocation2 + $0x98] sm:$0xff] %v658_v49  ;;  %704 = vmatmul.f32.gmra.mxu2 %v534_v50  ;;  %v460_v39 = vpop.f32.mrf.mxu3  ;;  %v449_v50 = vadd.f32 %v1181_v40, %v448_v19 }
 0x1ad   :  { %v546_v52 = vmax.f32 %v449_v50, 0.0 }
 0x1b0   :  { %v660_v54 = vpop.f32.mrf.mxu1 }
 0x1b1   :  { %v661_v55 = vadd.f32 %v1290_v48, %v660_v54 }
 0x1b3   :  { %812 = vst [vmem:[#allocation2 + $0xa0] sm:$0xff] %v661_v55  ;;  %707 = vmatmul.f32.gmra.mxu2 %v535_v56  ;;  %v463_v45 = vpop.f32.mrf.mxu3 }
 0x1b8   :  { %v663_v60 = vpop.f32.mrf.mxu1 }
 0x1b9   :  { %v664_v61 = vadd.f32 %v1290_v48, %v663_v60 }
 0x1bb   :  { %813 = vst [vmem:[#allocation2 + $0xa8] sm:$0xff] %v664_v61  ;;  %710 = vmatmul.f32.gmra.mxu2 %v536_v62  ;;  %v548_v62 = vmax.f32 %v455_v58, 0.0 }
 0x1bd   :  { %v466_v51 = vpop.f32.mrf.mxu3 }
 0x1c0   :  { %v666_v2 = vpop.f32.mrf.mxu1 }
 0x1c1   :  { %v667_v3 = vadd.f32 %v1290_v48, %v666_v2 }
 0x1c3   :  { %814 = vst [vmem:[#allocation2 + $0xb0] sm:$0xff] %v667_v3  ;;  %713 = vmatmul.f32.gmra.mxu2 %v537_v4  ;;  %v549_v3 = vmax.f32 %v458_v63, 0.0  ;;  %v461_v4 = vadd.f32 %v1181_v40, %v460_v39 }
 0x1c5   :  { %v469_v55 = vpop.f32.mrf.mxu3 }
 0x1c6   :  { %v470_v19 = vadd.f32 %v1181_v40, %v469_v55 }
 0x1c8   :  { %v669_v8 = vpop.f32.mrf.mxu1  ;;  %v553_v23 = vmax.f32 %v470_v19, 0.0 }
 0x1c9   :  { %v670_v9 = vadd.f32 %v1290_v48, %v669_v8  ;;  %v550_v8 = vmax.f32 %v461_v4, 0.0 }
 0x1cb   :  { %815 = vst [vmem:[#allocation2 + $0xb8] sm:$0xff] %v670_v9  ;;  %716 = vmatmul.f32.gmra.mxu2 %v538_v10  ;;  %v464_v9 = vadd.f32 %v1181_v40, %v463_v45 }
 0x1cd   :  { %v551_v13 = vmax.f32 %v464_v9, 0.0 }
 0x1cf   :  { %v472_v60 = vpop.f32.mrf.mxu3 }
 0x1d0   :  { %v672_v14 = vpop.f32.mrf.mxu1  ;;  %v473_v24 = vadd.f32 %v1181_v40, %v472_v60 }
 0x1d1   :  { %v673_v15 = vadd.f32 %v1290_v48, %v672_v14  ;;  %v467_v14 = vadd.f32 %v1181_v40, %v466_v51 }
 0x1d2   :  { %v554_v28 = vmax.f32 %v473_v24, 0.0 }
 0x1d3   :  { %816 = vst [vmem:[#allocation2 + $0xc0] sm:$0xff] %v673_v15  ;;  %719 = vmatmul.f32.gmra.mxu2 %v539_v16  ;;  %v552_v18 = vmax.f32 %v467_v14, 0.0 }
 0x1d7   :  { %v475_v1 = vpop.f32.mrf.mxu3 }
 0x1d8   :  { %v675_v20 = vpop.f32.mrf.mxu1  ;;  %v476_v29 = vadd.f32 %v1181_v40, %v475_v1 }
 0x1d9   :  { %v676_v21 = vadd.f32 %v1290_v48, %v675_v20 }
 0x1da   :  { %v555_v34 = vmax.f32 %v476_v29, 0.0 }
 0x1db   :  { %817 = vst [vmem:[#allocation2 + $0xc8] sm:$0xff] %v676_v21  ;;  %722 = vmatmul.f32.gmra.mxu2 %v540_v22 }
 0x1df   :  { %v478_v6 = vpop.f32.mrf.mxu3 }
 0x1e0   :  { %v678_v25 = vpop.f32.mrf.mxu1 }
 0x1e1   :  { %v679_v27 = vadd.f32 %v1290_v48, %v678_v25 }
 0x1e3   :  { %818 = vst [vmem:[#allocation2 + $0xd0] sm:$0xff] %v679_v27  ;;  %725 = vmatmul.f32.gmra.mxu2 %v541_v26 }
 0x1e7   :  { %v481_v11 = vpop.f32.mrf.mxu3 }
 0x1e8   :  { %v681_v30 = vpop.f32.mrf.mxu1  ;;  %v482_v44 = vadd.f32 %v1181_v40, %v481_v11 }
 0x1e9   :  { %v682_v32 = vadd.f32 %v1290_v48, %v681_v30 }
 0x1eb   :  { %819 = vst [vmem:[#allocation2 + $0xd8] sm:$0xff] %v682_v32  ;;  %728 = vmatmul.f32.gmra.mxu2 %v542_v31 }
 0x1ef   :  { %v484_v16 = vpop.f32.mrf.mxu3 }
 0x1f0   :  { %v684_v35 = vpop.f32.mrf.mxu1 }
 0x1f1   :  { %v685_v37 = vadd.f32 %v1290_v48, %v684_v35 }
 0x1f3   :  { %820 = vst [vmem:[#allocation2 + $0xe0] sm:$0xff] %v685_v37  ;;  %731 = vmatmul.f32.gmra.mxu2 %v543_v36  ;;  %v479_v36 = vadd.f32 %v1181_v40, %v478_v6 }
 0x1f7   :  { %v487_v21 = vpop.f32.mrf.mxu3 }
 0x1f8   :  { %v687_v41 = vpop.f32.mrf.mxu1  ;;  %v488_v53 = vadd.f32 %v1181_v40, %v487_v21 }
 0x1f9   :  { %v688_v43 = vadd.f32 %v1290_v48, %v687_v41 }
 0x1fb   :  { %821 = vst [vmem:[#allocation2 + $0xe8] sm:$0xff] %v688_v43  ;;  %734 = vmatmul.f32.gmra.mxu2 %v544_v42  ;;  %v556_v42 = vmax.f32 %v479_v36, 0.0 }
 0x1ff   :  { %v490_v26 = vpop.f32.mrf.mxu3 }
 0x200   :  { %v690_v46 = vpop.f32.mrf.mxu1 }
 0x201   :  { %v691_v49 = vadd.f32 %v1290_v48, %v690_v46 }
 0x203   :  { %822 = vst [vmem:[#allocation2 + $0xf0] sm:$0xff] %v691_v49  ;;  %737 = vmatmul.f32.gmra.mxu2 %v545_v47  ;;  %v557_v47 = vmax.f32 %v482_v44, 0.0  ;;  %v485_v49 = vadd.f32 %v1181_v40, %v484_v16 }
 0x207   :  { %v493_v31 = vpop.f32.mrf.mxu3 }
 0x208   :  { %v494_v33 = vadd.f32 %v1181_v40, %v493_v31 }
 0x20a   :  { %v561_v35 = vmax.f32 %v494_v33, 0.0 }
 0x20b   :  { %740 = vmatmul.f32.gmra.mxu2 %v546_v52  ;;  %v558_v52 = vmax.f32 %v485_v49, 0.0 }
 0x20c   :  { %785 = vmatmul.f32.vlgmr.msrb.gmra.mxu3 %v561_v35 }
 0x20e   :  { %v693_v54 = vpop.f32.mrf.mxu2 }
 0x20f   :  { %v694_v56 = vadd.f32 %v1290_v48, %v693_v54  ;;  %v496_v38 = vpop.f32.mrf.mxu3 }
 0x210   :  { %v497_v41 = vadd.f32 %v1181_v40, %v496_v38 }
 0x211   :  { %823 = vst [vmem:[#allocation2 + $0xf8] sm:$0xff] %v694_v56  ;;  %v559_v56 = vmax.f32 %v488_v53, 0.0 }
 0x212   :  { %v562_v43 = vmax.f32 %v497_v41, 0.0 }
 0x213   :  { %743 = vmatmul.f32.gmra.mxu2 %v547_v57  ;;  %v491_v57 = vadd.f32 %v1181_v40, %v490_v26 }
 0x214   :  { %788 = vmatmul.f32.gmra.mxu3 %v562_v43 }
 0x215   :  { %v560_v60 = vmax.f32 %v491_v57, 0.0 }
 0x216   :  { %v696_v59 = vpop.f32.mrf.mxu2 }
 0x217   :  { %v697_v61 = vadd.f32 %v1290_v48, %v696_v59 }
 0x219   :  { %824 = vst [vmem:[#allocation2 + $0x100] sm:$0xff] %v697_v61 }
 0x21b   :  { %746 = vmatmul.f32.gmra.mxu2 %v548_v62 }
 0x21e   :  { %v699_v0 = vpop.f32.mrf.mxu2 }
 0x21f   :  { %v700_v2 = vadd.f32 %v1290_v48, %v699_v0 }
 0x221   :  { %825 = vst [vmem:[#allocation2 + $0x108] sm:$0xff] %v700_v2 }
 0x223   :  { %749 = vmatmul.f32.gmra.mxu2 %v549_v3 }
 0x226   :  { %v702_v5 = vpop.f32.mrf.mxu2 }
 0x227   :  { %v703_v7 = vadd.f32 %v1290_v48, %v702_v5 }
 0x229   :  { %826 = vst [vmem:[#allocation2 + $0x110] sm:$0xff] %v703_v7 }
 0x22b   :  { %752 = vmatmul.f32.gmra.mxu2 %v550_v8 }
 0x22e   :  { %v705_v10 = vpop.f32.mrf.mxu2 }
 0x22f   :  { %v706_v12 = vadd.f32 %v1290_v48, %v705_v10 }
 0x231   :  { %827 = vst [vmem:[#allocation2 + $0x118] sm:$0xff] %v706_v12 }
 0x233   :  { %755 = vmatmul.f32.gmra.mxu2 %v551_v13 }
 0x236   :  { %v708_v15 = vpop.f32.mrf.mxu2 }
 0x237   :  { %v709_v17 = vadd.f32 %v1290_v48, %v708_v15 }
 0x239   :  { %828 = vst [vmem:[#allocation2 + $0x120] sm:$0xff] %v709_v17 }
 0x23b   :  { %758 = vmatmul.f32.gmra.mxu2 %v552_v18 }
 0x23e   :  { %v711_v20 = vpop.f32.mrf.mxu2 }
 0x23f   :  { %v712_v22 = vadd.f32 %v1290_v48, %v711_v20 }
 0x241   :  { %829 = vst [vmem:[#allocation2 + $0x128] sm:$0xff] %v712_v22 }
 0x243   :  { %761 = vmatmul.f32.gmra.mxu2 %v553_v23 }
 0x246   :  { %v714_v25 = vpop.f32.mrf.mxu2 }
 0x247   :  { %v715_v27 = vadd.f32 %v1290_v48, %v714_v25 }
 0x249   :  { %830 = vst [vmem:[#allocation2 + $0x130] sm:$0xff] %v715_v27 }
 0x24b   :  { %764 = vmatmul.f32.gmra.mxu2 %v554_v28 }
 0x24e   :  { %v717_v30 = vpop.f32.mrf.mxu2 }
 0x24f   :  { %v718_v32 = vadd.f32 %v1290_v48, %v717_v30 }
 0x251   :  { %831 = vst [vmem:[#allocation2 + $0x138] sm:$0xff] %v718_v32 }
 0x253   :  { %767 = vmatmul.f32.gmra.mxu2 %v555_v34 }
 0x256   :  { %v720_v37 = vpop.f32.mrf.mxu2 }
 0x257   :  { %v721_v39 = vadd.f32 %v1290_v48, %v720_v37 }
 0x259   :  { %832 = vst [vmem:[#allocation2 + $0x140] sm:$0xff] %v721_v39 }
 0x25b   :  { %770 = vmatmul.f32.gmra.mxu2 %v556_v42 }
 0x25e   :  { %v723_v45 = vpop.f32.mrf.mxu2 }
 0x25f   :  { %v724_v46 = vadd.f32 %v1290_v48, %v723_v45 }
 0x261   :  { %833 = vst [vmem:[#allocation2 + $0x148] sm:$0xff] %v724_v46 }
 0x263   :  { %773 = vmatmul.f32.gmra.mxu2 %v557_v47 }
 0x266   :  { %v726_v50 = vpop.f32.mrf.mxu2 }
 0x267   :  { %v727_v51 = vadd.f32 %v1290_v48, %v726_v50 }
 0x269   :  { %834 = vst [vmem:[#allocation2 + $0x150] sm:$0xff] %v727_v51 }
 0x26b   :  { %776 = vmatmul.f32.gmra.mxu2 %v558_v52 }
 0x26e   :  { %v729_v54 = vpop.f32.mrf.mxu2 }
 0x26f   :  { %v730_v55 = vadd.f32 %v1290_v48, %v729_v54 }
 0x271   :  { %835 = vst [vmem:[#allocation2 + $0x158] sm:$0xff] %v730_v55 }
 0x273   :  { %779 = vmatmul.f32.gmra.mxu2 %v559_v56 }
 0x276   :  { %v732_v58 = vpop.f32.mrf.mxu2 }
 0x277   :  { %v733_v59 = vadd.f32 %v1290_v48, %v732_v58 }
 0x279   :  { %836 = vst [vmem:[#allocation2 + $0x160] sm:$0xff] %v733_v59 }
 0x27b   :  { %782 = vmatmul.f32.gmra.mxu2 %v560_v60 }
 0x27e   :  { %v735_v61 = vpop.f32.mrf.mxu2 }
 0x27f   :  { %v736_v62 = vadd.f32 %v1290_v48, %v735_v61 }
 0x281   :  { %837 = vst [vmem:[#allocation2 + $0x168] sm:$0xff] %v736_v62 }
 0x286   :  { %v738_v63 = vpop.f32.mrf.mxu2 }
 0x287   :  { %v739_v0 = vadd.f32 %v1290_v48, %v738_v63 }
 0x289   :  { %838 = vst [vmem:[#allocation2 + $0x170] sm:$0xff] %v739_v0 }
 0x28e   :  { %v741_v1 = vpop.f32.mrf.mxu2 }
 0x28f   :  { %v742_v2 = vadd.f32 %v1290_v48, %v741_v1  ;;  %v786_v19 = vpop.f32.mrf.mxu3 }
 0x290   :  { %v787_v21 = vadd.f32 %v1290_v48, %v786_v19 }
 0x291   :  { %839 = vst [vmem:[#allocation2 + $0x178] sm:$0xff] %v742_v2 }
 0x292   :  { %854 = vst [vmem:[#allocation2 + $0x1f0] sm:$0xff] %v787_v21 }
 0x296   :  { %v744_v3 = vpop.f32.mrf.mxu2 }
 0x297   :  { %v745_v40 = vadd.f32 %v1290_v48, %v744_v3  ;;  %v789_v23 = vpop.f32.mrf.mxu3 }
 0x298   :  { %v790_v25 = vadd.f32 %v1290_v48, %v789_v23 }
 0x299   :  { %840 = vst [vmem:[#allocation2 + $0x180] sm:$0xff] %v745_v40 }
 0x29a   :  { %855 = vst [vmem:[#allocation2 + $0x1f8] sm:$0xff] %v790_v25 }
 0x29e   :  { %v747_v4 = vpop.f32.mrf.mxu2 }
 0x29f   :  { %v748_v5 = vadd.f32 %v1290_v48, %v747_v4 }
 0x2a1   :  { %841 = vst [vmem:[#allocation2 + $0x188] sm:$0xff] %v748_v5 }
 0x2a6   :  { %v750_v6 = vpop.f32.mrf.mxu2 }
 0x2a7   :  { %v751_v7 = vadd.f32 %v1290_v48, %v750_v6 }
 0x2a9   :  { %842 = vst [vmem:[#allocation2 + $0x190] sm:$0xff] %v751_v7 }
 0x2ae   :  { %v753_v8 = vpop.f32.mrf.mxu2 }
 0x2af   :  { %v754_v9 = vadd.f32 %v1290_v48, %v753_v8 }
 0x2b1   :  { %843 = vst [vmem:[#allocation2 + $0x198] sm:$0xff] %v754_v9 }
 0x2b6   :  { %v756_v10 = vpop.f32.mrf.mxu2 }
 0x2b7   :  { %v757_v11 = vadd.f32 %v1290_v48, %v756_v10 }
 0x2b9   :  { %844 = vst [vmem:[#allocation2 + $0x1a0] sm:$0xff] %v757_v11 }
 0x2be   :  { %v759_v12 = vpop.f32.mrf.mxu2 }
 0x2bf   :  { %v760_v13 = vadd.f32 %v1290_v48, %v759_v12 }
 0x2c1   :  { %845 = vst [vmem:[#allocation2 + $0x1a8] sm:$0xff] %v760_v13 }
 0x2c6   :  { %v762_v14 = vpop.f32.mrf.mxu2 }
 0x2c7   :  { %v763_v15 = vadd.f32 %v1290_v48, %v762_v14 }
 0x2c9   :  { %846 = vst [vmem:[#allocation2 + $0x1b0] sm:$0xff] %v763_v15 }
 0x2ce   :  { %v765_v16 = vpop.f32.mrf.mxu2 }
 0x2cf   :  { %v766_v17 = vadd.f32 %v1290_v48, %v765_v16 }
 0x2d1   :  { %847 = vst [vmem:[#allocation2 + $0x1b8] sm:$0xff] %v766_v17 }
 0x2d6   :  { %v768_v18 = vpop.f32.mrf.mxu2 }
 0x2d7   :  { %v769_v20 = vadd.f32 %v1290_v48, %v768_v18 }
 0x2d9   :  { %848 = vst [vmem:[#allocation2 + $0x1c0] sm:$0xff] %v769_v20 }
 0x2de   :  { %v771_v22 = vpop.f32.mrf.mxu2 }
 0x2df   :  { %v772_v24 = vadd.f32 %v1290_v48, %v771_v22 }
 0x2e1   :  { %849 = vst [vmem:[#allocation2 + $0x1c8] sm:$0xff] %v772_v24 }
 0x2e6   :  { %v774_v26 = vpop.f32.mrf.mxu2 }
 0x2e7   :  { %v775_v27 = vadd.f32 %v1290_v48, %v774_v26 }
 0x2e9   :  { %850 = vst [vmem:[#allocation2 + $0x1d0] sm:$0xff] %v775_v27 }
 0x2ee   :  { %v777_v28 = vpop.f32.mrf.mxu2 }
 0x2ef   :  { %v778_v29 = vadd.f32 %v1290_v48, %v777_v28 }
 0x2f1   :  { %851 = vst [vmem:[#allocation2 + $0x1d8] sm:$0xff] %v778_v29 }
 0x2f6   :  { %v780_v30 = vpop.f32.mrf.mxu2 }
 0x2f7   :  { %v781_v31 = vadd.f32 %v1290_v48, %v780_v30 }
 0x2f9   :  { %852 = vst [vmem:[#allocation2 + $0x1e0] sm:$0xff] %v781_v31 }
 0x2fe   :  { %v783_v32 = vpop.f32.mrf.mxu2 }
 0x2ff   :  { %v784_v33 = vadd.f32 %v1290_v48, %v783_v32 }
 0x301   :  { %853 = vst [vmem:[#allocation2 + $0x1e8] sm:$0xff] %v784_v33 }
 0x302   :  { %868 = dma.vmem_to_hbm [thread:$0]  %s861_s7, 8192, %s863_s10, [#allocation3], %s1010_s11, %s1010_s11, %s1011_s12  }
 0x303   :  { %1007 = dma.done.wait [#allocation3], 8192  }
 0x304   :  { %1008 = vsyncadd [#allocation3], 4294959104 }
 0x305   :  { %873 = vsyncpa [#allocation3], 1 }

</bundles_post_ra>
